<compile_context>
chip_gen: v7x
topology: tpu7x:2x2x1
jax: 0.10.0
libtpu: 0.0.40
codegen_flags: <defaults>
</compile_context>

<pallas_src>
import functools

import jax
import jax.numpy as jnp
from jax.experimental import pallas as pl
from jax.experimental.pallas import tpu as pltpu

_LANE = 128
_SUB = 8
_MAX_BLOCK_ROWS = 4096                 # 4096 * 128 * 4B = 2 MiB per f32 input block
_VMEM_LIMIT = 48 * 1024 * 1024         # <= ~48 MiB: fits v7x's 64 MiB/TC with headroom


def _num_core_splits():
    """2-way 'parallel' split only pays off on chips with 2 TensorCores (v7x)."""
    try:
        kind = jax.devices()[0].device_kind.lower()
    except Exception:
        return 1
    return 2 if "v7" in kind else 1


def _loss_elem(x, y, inv_alpha):
    """Plain-jnp per-element loss (used for the tiny ragged tail / fallback)."""
    x = x.astype(jnp.float32)
    y = y.astype(jnp.float32)
    t = jnp.exp(-jnp.abs(x))
    bce = jnp.maximum(x, 0.0) - x * y + jnp.log1p(t)
    sig = jax.nn.sigmoid(x)
    alpha_factor = 1.0 - jnp.exp((sig - y - 1.0) * inv_alpha)
    return bce * alpha_factor


def _bce_blur_kernel(pred_ref, true_ref, out_ref, *, inv_alpha, rows_valid,
                     block_rows, acc_rows, nb_per_split, need_mask):
    c = pl.program_id(0)          # TensorCore split ("parallel"; size 1 off-v7x)
    i = pl.program_id(1)          # reduction steps ("arbitrary")

    # Output block is resident across the i axis; zero it on the first step.
    @pl.when(i == 0)
    def _():
        out_ref[...] = jnp.zeros_like(out_ref)

    x = pred_ref[...].astype(jnp.float32)   # logits
    y = true_ref[...].astype(jnp.float32)   # targets

    # Numerically-stable BCEWithLogits(reduction='none'), sharing exp(-|x|)
    # between the loss and sigmoid so only 3 transcendentals hit the EUP.
    t = jnp.exp(-jnp.abs(x))
    bce = jnp.maximum(x, 0.0) - x * y + jnp.log1p(t)
    inv = 1.0 / (1.0 + t)
    sig = jnp.where(x >= 0.0, inv, t * inv)          # == sigmoid(x)
    dx = sig - y
    alpha_factor = 1.0 - jnp.exp((dx - 1.0) * inv_alpha)
    loss = bce * alpha_factor

    if need_mask:
        # Single row-index compare: the prefix fed to the kernel is a multiple of
        # 128 lanes, so only whole rows can be invalid (partial edge block or the
        # clamped overflow block on an odd v7x split). Keep this as a select
        # (jnp.where), NOT a multiply, so garbage/NaN in unfetched rows is dropped.
        block_idx = c * nb_per_split + i
        row0 = block_idx * block_rows
        row_ids = row0 + jax.lax.broadcasted_iota(
            jnp.int32, (block_rows, _LANE), 0)
        loss = jnp.where(row_ids < rows_valid, loss, 0.0)

    # VPU-only accumulation into the resident output block. acc_rows keeps the
    # reshape tile-aligned; 64 rows -> 8 independent accumulator vregs (ILP).
    part = loss.reshape(-1, acc_rows, _LANE).sum(axis=0)
    out_ref[...] += part[None, :, :]


def bce_blur_with_logits_loss(pred, true, alpha=0.05):
    """Pallas TPU implementation of BCEBlurWithLogitsLoss.forward."""
    assert pred.shape == true.shape
    n = pred.size
    inv_alpha = 1.0 / (float(alpha) + 0.0001)

    p = pred.reshape(-1)
    t = true.reshape(-1)

    # Alignment derived from input itemsize: f32 -> 8 sublanes, bf16 -> 16, int8 -> 32.
    itemsize = jnp.dtype(pred.dtype).itemsize
    sub = _SUB * max(1, 4 // max(1, itemsize))
    align = sub * _LANE

    n_main = (n // align) * align       # aligned prefix handled by the kernel
    tail = n - n_main                   # < align elements, handled in plain jnp

    if n_main == 0:
        # Input too small to fill one aligned tile; the jnp path is cheaper than
        # a padded kernel launch and keeps identical semantics.
        return jnp.sum(_loss_elem(p, t, inv_alpha)) / n

    rows = n_main // _LANE              # multiple of `sub`
    p2 = p[:n_main].reshape(rows, _LANE)    # pure view-style reshape, no pad copy
    t2 = t[:n_main].reshape(rows, _LANE)

    # Large lane-dense blocks amortize the ~0.35 us/step grid overhead.
    block_rows = _MAX_BLOCK_ROWS if rows >= _MAX_BLOCK_ROWS else rows
    acc_rows = 64 if block_rows % 64 == 0 else _SUB

    total_blocks = pl.cdiv(rows, block_rows)
    num_splits = _num_core_splits() if total_blocks > 1 else 1
    nb_per_split = pl.cdiv(total_blocks, num_splits)

    # Mask only needed for a partial edge block or a clamped overflow block.
    need_mask = (num_splits * nb_per_split * block_rows) != rows

    def in_map(c, i):
        # Clamp so an overflow block (odd split count on v7x) re-reads the last
        # real block instead of DMA-ing out of bounds; its contribution is zeroed
        # by the in-kernel validity mask (which uses the *nominal* block index).
        return (jnp.minimum(c * nb_per_split + i, total_blocks - 1), 0)

    if num_splits == 2:
        # v7x: 3-deep input buffering hides DMA issue latency at 3.2 TB/s.
        in_spec = pl.BlockSpec((block_rows, _LANE), in_map,
                               pipeline_mode=pl.Buffered(3))
    else:
        in_spec = pl.BlockSpec((block_rows, _LANE), in_map)

    kernel = functools.partial(
        _bce_blur_kernel, inv_alpha=inv_alpha, rows_valid=int(rows),
        block_rows=int(block_rows), acc_rows=int(acc_rows),
        nb_per_split=int(nb_per_split), need_mask=bool(need_mask))

    partials = pl.pallas_call(
        kernel,
        out_shape=jax.ShapeDtypeStruct((num_splits, acc_rows, _LANE),
                                       jnp.float32),
        grid_spec=pltpu.PrefetchScalarGridSpec(
            num_scalar_prefetch=0,
            grid=(num_splits, nb_per_split),
            in_specs=[in_spec, in_spec],
            out_specs=pl.BlockSpec((1, acc_rows, _LANE),
                                   lambda c, i: (c, 0, 0)),
        ),
        compiler_params=pltpu.CompilerParams(
            dimension_semantics=("parallel", "arbitrary"),
            vmem_limit_bytes=_VMEM_LIMIT),
    )(p2, t2)

    total = jnp.sum(partials)
    if tail:
        # Tiny epilogue over the ragged tail (< sub*128 elements) in plain jnp;
        # avoids a full-tensor pad copy (~2x HBM traffic) for ragged shapes.
        total = total + jnp.sum(_loss_elem(p[n_main:], t[n_main:], inv_alpha))
    return total / n


def _reference(pred, true, alpha=0.05):
    x = pred.astype(jnp.float32)
    y = true.astype(jnp.float32)
    loss = jnp.maximum(x, 0.0) - x * y + jnp.log1p(jnp.exp(-jnp.abs(x)))
    p = jax.nn.sigmoid(x)
    alpha_factor = 1.0 - jnp.exp((p - y - 1.0) / (alpha + 0.0001))
    return jnp.mean(loss * alpha_factor)


if __name__ == "__main__":
    key = jax.random.PRNGKey(0)
    k1, k2, k3, k4, k5, k6 = jax.random.split(key, 6)

    # 1) YOLO-style NCHW logit map; size is a multiple of 8*128 (single block).
    pred = jax.random.normal(k1, (2, 4, 16, 16), dtype=jnp.float32)
    true = (jax.random.uniform(k2, (2, 4, 16, 16)) > 0.5).astype(jnp.float32)
    out = jax.block_until_ready(bce_blur_with_logits_loss(pred, true, 0.05))
    ref = _reference(pred, true, 0.05)
    assert jnp.allclose(out, ref, rtol=1e-4, atol=1e-6), (out, ref)

    # 2) Ragged size (exercises the aligned-prefix kernel + plain-jnp tail path).
    pred2 = jax.random.normal(k3, (3, 5, 7, 11), dtype=jnp.float32)
    true2 = (jax.random.uniform(k4, (3, 5, 7, 11)) > 0.5).astype(jnp.float32)
    out2 = jax.block_until_ready(bce_blur_with_logits_loss(pred2, true2, 0.05))
    ref2 = _reference(pred2, true2, 0.05)
    assert jnp.allclose(out2, ref2, rtol=1e-4, atol=1e-6), (out2, ref2)

    # 3) Multi-block input (partial final block -> in-kernel mask; conditional
    #    2-way TensorCore split on v7x).
    pred3 = jax.random.normal(k5, (4, 16, 96, 96), dtype=jnp.float32)
    true3 = (jax.random.uniform(k6, (4, 16, 96, 96)) > 0.5).astype(jnp.float32)
    out3 = jax.block_until_ready(bce_blur_with_logits_loss(pred3, true3, 0.05))
    ref3 = _reference(pred3, true3, 0.05)
    assert jnp.allclose(out3, ref3, rtol=1e-4, atol=1e-6), (out3, ref3)

    print("KERNEL_OK")
</pallas_src>

<mosaic_0001>
module attributes {stable_mosaic.version = 11 : i64} {
  func.func @_bce_blur_kernel(%arg0: i32, %arg1: i32, %arg2: memref<16x128xf32, #tpu.memory_space<vmem>>, %arg3: memref<16x128xf32, #tpu.memory_space<vmem>>, %arg4: memref<1x8x128xf32, #tpu.memory_space<vmem>>) attributes {dimension_semantics = [#tpu.dimension_semantics<parallel>, #tpu.dimension_semantics<arbitrary>], iteration_bounds = array<i64: 1, 1>, scalar_prefetch = 0 : i64, scratch_operands = 0 : i64, tpu.core_type = #tpu.core_type<tc>, window_params = [{transform_indices = @transform_0, window_bounds = array<i64: 16, 128>}, {transform_indices = @transform_1, window_bounds = array<i64: 16, 128>}, {transform_indices = @transform_2, window_bounds = array<i64: 1, 8, 128>}]} {
    %c0_i32 = arith.constant 0 : i32
    %0 = arith.cmpi eq, %arg1, %c0_i32 : i32
    %1 = arith.extui %0 : i1 to i32
    %c0_i32_0 = arith.constant 0 : i32
    %2 = arith.cmpi ne, %1, %c0_i32_0 : i32
    scf.if %2 {
      %cst_18 = arith.constant 0.000000e+00 : f32
      %38 = vector.broadcast %cst_18 : f32 to vector<1x8x128xf32>
      %c0_19 = arith.constant 0 : index
      %c0_20 = arith.constant 0 : index
      %c0_21 = arith.constant 0 : index
      %39 = vector.load %arg4[%c0_19, %c0_20, %c0_21] : memref<1x8x128xf32, #tpu.memory_space<vmem>>, vector<1x8x128xf32>
      tpu.vector_store %arg4[%c0_19, %c0_20, %c0_21], %38 {strides = array<i32>} : memref<1x8x128xf32, #tpu.memory_space<vmem>>, vector<1x8x128xf32>,
    } else {
    }
    %c0 = arith.constant 0 : index
    %c0_1 = arith.constant 0 : index
    %3 = vector.load %arg2[%c0, %c0_1] : memref<16x128xf32, #tpu.memory_space<vmem>>, vector<16x128xf32>
    %c0_2 = arith.constant 0 : index
    %c0_3 = arith.constant 0 : index
    %4 = vector.load %arg3[%c0_2, %c0_3] : memref<16x128xf32, #tpu.memory_space<vmem>>, vector<16x128xf32>
    %5 = math.absf %3 : vector<16x128xf32>
    %cst = arith.constant 0.000000e+00 : f32
    %6 = vector.broadcast %cst : f32 to vector<16x128xf32>
    %7 = arith.subf %6, %5 : vector<16x128xf32>
    %8 = math.exp %7 : vector<16x128xf32>
    %cst_4 = arith.constant 0.000000e+00 : f32
    %9 = vector.broadcast %cst_4 : f32 to vector<16x128xf32>
    %10 = arith.maximumf %3, %9 : vector<16x128xf32>
    %11 = arith.mulf %3, %4 : vector<16x128xf32>
    %12 = arith.subf %10, %11 : vector<16x128xf32>
    %13 = math.log1p %8 : vector<16x128xf32>
    %14 = arith.addf %12, %13 : vector<16x128xf32>
    %cst_5 = arith.constant 1.000000e+00 : f32
    %15 = vector.broadcast %cst_5 : f32 to vector<16x128xf32>
    %16 = arith.addf %15, %8 : vector<16x128xf32>
    %cst_6 = arith.constant 1.000000e+00 : f32
    %17 = vector.broadcast %cst_6 : f32 to vector<16x128xf32>
    %18 = arith.divf %17, %16 : vector<16x128xf32>
    %cst_7 = arith.constant 0.000000e+00 : f32
    %19 = vector.broadcast %cst_7 : f32 to vector<16x128xf32>
    %20 = arith.cmpf oge, %3, %19 : vector<16x128xf32>
    %21 = arith.mulf %8, %18 : vector<16x128xf32>
    %22 = arith.select %20, %18, %21 : vector<16x128xi1>, vector<16x128xf32>
    %23 = arith.subf %22, %4 : vector<16x128xf32>
    %cst_8 = arith.constant 1.000000e+00 : f32
    %24 = vector.broadcast %cst_8 : f32 to vector<16x128xf32>
    %25 = arith.subf %23, %24 : vector<16x128xf32>
    %cst_9 = arith.constant 19.9600792 : f32
    %26 = vector.broadcast %cst_9 : f32 to vector<16x128xf32>
    %27 = arith.mulf %25, %26 : vector<16x128xf32>
    %28 = math.exp %27 : vector<16x128xf32>
    %cst_10 = arith.constant 1.000000e+00 : f32
    %29 = vector.broadcast %cst_10 : f32 to vector<16x128xf32>
    %30 = arith.subf %29, %28 : vector<16x128xf32>
    %31 = arith.mulf %14, %30 : vector<16x128xf32>
    %32 = vector.shape_cast %31 : vector<16x128xf32> to vector<2x8x128xf32>
    %cst_11 = arith.constant dense<0.000000e+00> : vector<8x128xf32>
    %33 = vector.multi_reduction <add>, %32, %cst_11 [0] : vector<2x8x128xf32> to vector<8x128xf32>
    %c0_12 = arith.constant 0 : index
    %c0_13 = arith.constant 0 : index
    %c0_14 = arith.constant 0 : index
    %34 = vector.load %arg4[%c0_12, %c0_13, %c0_14] : memref<1x8x128xf32, #tpu.memory_space<vmem>>, vector<1x8x128xf32>
    %35 = vector.shape_cast %33 : vector<8x128xf32> to vector<1x8x128xf32>
    %36 = arith.addf %34, %35 : vector<1x8x128xf32>
    %c0_15 = arith.constant 0 : index
    %c0_16 = arith.constant 0 : index
    %c0_17 = arith.constant 0 : index
    %37 = vector.load %arg4[%c0_15, %c0_16, %c0_17] : memref<1x8x128xf32, #tpu.memory_space<vmem>>, vector<1x8x128xf32>
    tpu.vector_store %arg4[%c0_15, %c0_16, %c0_17], %36 {strides = array<i32>} : memref<1x8x128xf32, #tpu.memory_space<vmem>>, vector<1x8x128xf32>,
    return
  }
  func.func @transform_0(%arg0: i32, %arg1: i32) -> (i32, i32) {
    %c1_i32 = arith.constant 1 : i32
    %0 = arith.muli %arg0, %c1_i32 : i32
    %1 = arith.addi %0, %arg1 : i32
    %c0_i32 = arith.constant 0 : i32
    %2 = arith.minsi %1, %c0_i32 : i32
    %c0_i32_0 = arith.constant 0 : i32
    %c0_i32_1 = arith.constant 0 : i32
    return %2, %c0_i32_0 : i32, i32
  }
  func.func @transform_1(%arg0: i32, %arg1: i32) -> (i32, i32) {
    %c1_i32 = arith.constant 1 : i32
    %0 = arith.muli %arg0, %c1_i32 : i32
    %1 = arith.addi %0, %arg1 : i32
    %c0_i32 = arith.constant 0 : i32
    %2 = arith.minsi %1, %c0_i32 : i32
    %c0_i32_0 = arith.constant 0 : i32
    %c0_i32_1 = arith.constant 0 : i32
    return %2, %c0_i32_0 : i32, i32
  }
  func.func @transform_2(%arg0: i32, %arg1: i32) -> (i32, i32, i32) {
    %c0_i32 = arith.constant 0 : i32
    %c0_i32_0 = arith.constant 0 : i32
    %c0_i32_1 = arith.constant 0 : i32
    return %arg0, %c0_i32, %c0_i32_0 : i32, i32, i32
  }
}

</mosaic_0001>

<bundles_post_ra>
// kernel: tpu_custom_call.1
= control target key start
LH: loop header
LB: loop body
LE: loop exit
PB: predicated region body
PF: predicated region fallthrough
CT: control target
= control target key end

     0   :  { %7 = vsyncpa [#allocation3], 0  ;;  %s305_s0 = inlined_call_operand.hbm [shape: f32[16,128], index: 0, kind: input, shape index: {}]   ;;  %s306_s1 = inlined_call_operand.hbm [shape: f32[16,128], index: 1, kind: input, shape index: {}]   ;;  %s307_s2 = inlined_call_operand.hbm [shape: f32[1,8,128], index: 2, kind: output, shape index: {}]  }
   0x1   :  { %8 = vsyncpa [#allocation6], 0 }
   0x2   :  { %9 = vsyncpa [#allocation4], 0  ;;  %s249_s9 = smov [#allocation2]   ;;  %s177_s13 = scalar_lea.hbm %s305_s0, 256 }
   0x3   :  { %s21_s10 = sshll.u32 %s249_s9, 4  ;;  %p178_p0 = scmp.ne.s32.totalorder %s305_s0, %s177_s13  ;;  %s22_s10 = int_to_ptr.vmem [resolvable:$true] %s21_s10 }
   0x4   :  { %p181_p1 = scmp.lt.u32.totalorder %s177_s13, %s305_s0 }
   0x6   :  { %p183_p2 = pnand %p181_p1, %p178_p0 }
   0x8   :  { %186 = shalt.err (!%p183_p2)
}
   0x9   :  { %s187_s18 = scalar_lea.vmem %s22_s10, 256  ;;  %p192_p4 = scmp.lt.s32.totalorder %s22_s10, %s22_s10 }
   0xa   :  { %p188_p3 = scmp.ne.s32.totalorder %s22_s10, %s187_s18  ;;  %p193_p5 = scmp.lt.s32.totalorder %s187_s18, %s187_s18 }
   0xc   :  { %p194_p6 = por %p193_p5, %p192_p4 }
   0xe   :  { %p195_p7 = pnand %p194_p6, %p188_p3 }
  0x10   :  { %198 = shalt.err (!%p195_p7)
}
  0x11   :  { %s250_s19 = smov 128   ;;  %s251_s20 = smov 8  }
  0x12   :  { %27 = dma.hbm_to_vmem [thread:$0]  %s305_s0, 256, %s22_s10, [#allocation3], %s250_s19, %s250_s19, %s251_s20  }
  0x13   :  { %s252_s23 = smov [#allocation5]   ;;  %s199_s27 = scalar_lea.hbm %s306_s1, 256 }
  0x14   :  { %s39_s24 = sshll.u32 %s252_s23, 4  ;;  %p200_p8 = scmp.ne.s32.totalorder %s306_s1, %s199_s27  ;;  %s40_s24 = int_to_ptr.vmem [resolvable:$true] %s39_s24 }
  0x15   :  { %p203_p9 = scmp.lt.u32.totalorder %s199_s27, %s306_s1 }
  0x17   :  { %p205_p10 = pnand %p203_p9, %p200_p8 }
  0x19   :  { %208 = shalt.err (!%p205_p10)
}
  0x1a   :  { %s209_s4 = scalar_lea.vmem %s40_s24, 256  ;;  %p214_p12 = scmp.lt.s32.totalorder %s40_s24, %s40_s24 }
  0x1b   :  { %p210_p11 = scmp.ne.s32.totalorder %s40_s24, %s209_s4  ;;  %p215_p13 = scmp.lt.s32.totalorder %s209_s4, %s209_s4 }
  0x1d   :  { %p216_p0 = por %p215_p13, %p214_p12 }
  0x1f   :  { %p217_p1 = pnand %p216_p0, %p210_p11 }
  0x21   :  { %220 = shalt.err (!%p217_p1)
}
  0x22   :  { %45 = dma.hbm_to_vmem [thread:$0]  %s306_s1, 256, %s40_s24, [#allocation6], %s250_s19, %s250_s19, %s251_s20  }
  0x23   :  { %243 = dma.done.wait [#allocation3], 256  }
  0x24   :  { %244 = vsyncadd [#allocation3], 4294967040 }
  0x25   :  { %245 = dma.done.wait [#allocation6], 256  }
  0x26   :  { %246 = vsyncadd [#allocation6], 4294967040  ;;  %v65_v0 = vld [vmem:[#allocation2] sm:$0xff]  ;;  %v66_v1 = vld [vmem:[#allocation2 + $0x8] sm:$0xff]  ;;  %s253_s1 = smov [#allocation7]  }
  0x27   :  { %v69_v2 = vand.u32 2147483647, %v65_v0  ;;  %v70_v3 = vand.u32 2147483647, %v66_v1  ;;  %vm109_vm0 = vcmp.ge.f32.partialorder %v65_v0, 0.0  ;;  %v67_v14 = vld [vmem:[#allocation5] sm:$0xff] }
  0x28   :  { %vm110_vm1 = vcmp.ge.f32.partialorder %v66_v1, 0.0  ;;  %v68_v16 = vld [vmem:[#allocation5 + $0x8] sm:$0xff]  ;;  %v77_v36 = vmax.f32 %v65_v0, 0.0  ;;  %v79_v37 = vmul.f32 %v67_v14, %v65_v0  ;;  %v78_v38 = vmax.f32 %v66_v1, 0.0  ;;  %s139_s6 = sshll.u32 %s253_s1, 4  ;;  %s140_s6 = int_to_ptr.vmem [resolvable:$true] %s139_s6 }
  0x29   :  { %v71_v4 = vsub.f32 0.0, %v69_v2  ;;  %v72_v5 = vsub.f32 0.0, %v70_v3  ;;  %v80_v39 = vmul.f32 %v68_v16, %v66_v1  ;;  %s221_s7 = scalar_lea.vmem %s140_s6, 128  ;;  %p226_p3 = scmp.lt.s32.totalorder %s140_s6, %s140_s6 }
  0x2a   :  { %v81_v44 = vsub.f32 %v77_v36, %v79_v37  ;;  %p222_p2 = scmp.ne.s32.totalorder %s140_s6, %s221_s7  ;;  %p227_p4 = scmp.lt.s32.totalorder %s221_s7, %s221_s7 }
  0x2b   :  { %v73_v6 = vmul.f32 1.442695, %v71_v4  ;;  %v75_v7 = vmul.f32 1.442695, %v72_v5  ;;  %v82_v45 = vsub.f32 %v78_v38, %v80_v39 }
  0x2c   :  { %p228_p5 = por %p227_p4, %p226_p3 }
  0x2d   :  { %161 = vpow2.f32 %v73_v6 }
  0x2e   :  { %163 = vpow2.f32 %v75_v7  ;;  %p229_p6 = pnand %p228_p5, %p222_p2 }
  0x37   :  { %v162_v8 = vpop.eup %161 }
  0x38   :  { %v164_v9 = vpop.eup %163  ;;  %v83_v10 = vadd.f32 1.0, %v162_v8  ;;  %v86_v22 = vmul.f32 -0.5, %v162_v8  ;;  %v89_v31 = vand.u32 2147483647, %v162_v8 }
  0x39   :  { %v92_v11 = vadd.f32 1.0, %v164_v9  ;;  %v95_v24 = vmul.f32 -0.5, %v164_v9  ;;  %v98_v35 = vand.u32 2147483647, %v164_v9 }
  0x3a   :  { %165 = vrcp.f32 %v83_v10  ;;  %v87_v28 = vadd.f32 1.0, %v86_v22  ;;  %vm90_vm2 = vcmp.lt.f32.partialorder %v89_v31, 0.0004427343 }
  0x3b   :  { %167 = vrcp.f32 %v92_v11  ;;  %v96_v32 = vadd.f32 1.0, %v95_v24  ;;  %vm99_vm3 = vcmp.lt.f32.partialorder %v98_v35, 0.0004427343 }
  0x3c   :  { %169 = vlog2.f32 %v83_v10  ;;  %v88_v41 = vmul.f32 %v162_v8, %v87_v28 }
  0x3d   :  { %171 = vlog2.f32 %v92_v11  ;;  %v97_v43 = vmul.f32 %v164_v9, %v96_v32 }
  0x44   :  { %v166_v12 = vpop.eup %165 }
  0x45   :  { %v168_v13 = vpop.eup %167  ;;  %v111_v15 = vmul.f32 %v166_v12, %v162_v8 }
  0x46   :  { %v112_v17 = vmul.f32 %v168_v13, %v164_v9  ;;  %v170_v30 = vpop.eup %169 }
  0x47   :  { %v113_v18 = vsel %vm109_vm0, %v166_v12, %v111_v15  ;;  %v172_v34 = vpop.eup %171  ;;  %v85_v40 = vmul.f32 0.6931472, %v170_v30 }
  0x48   :  { %v114_v19 = vsel %vm110_vm1, %v168_v13, %v112_v17  ;;  %v115_v20 = vsub.f32 %v113_v18, %v67_v14  ;;  %v94_v42 = vmul.f32 0.6931472, %v172_v34 }
  0x49   :  { %v116_v21 = vsub.f32 %v114_v19, %v68_v16  ;;  %v91_v46 = vsel %vm90_vm2, %v88_v41, %v85_v40 }
  0x4a   :  { %v153_v23 = vadd.f32 -1.0, %v115_v20  ;;  %v100_v47 = vsel %vm99_vm3, %v97_v43, %v94_v42  ;;  %v101_v48 = vadd.f32 %v91_v46, %v81_v44 }
  0x4b   :  { %v154_v25 = vadd.f32 -1.0, %v116_v21  ;;  %v102_v50 = vadd.f32 %v100_v47, %v82_v45 }
  0x4c   :  { %v119_v26 = vmul.f32 19.96008, %v153_v23 }
  0x4d   :  { %v120_v27 = vmul.f32 19.96008, %v154_v25 }
  0x4e   :  { %v121_v29 = vmul.f32 1.442695, %v119_v26 }
  0x4f   :  { %v123_v33 = vmul.f32 1.442695, %v120_v27 }
  0x50   :  { %173 = vpow2.f32 %v121_v29 }
  0x51   :  { %175 = vpow2.f32 %v123_v33 }
  0x5a   :  { %v174_v49 = vpop.eup %173 }
  0x5b   :  { %v176_v51 = vpop.eup %175  ;;  %v125_v52 = vsub.f32 1.0, %v174_v49 }
  0x5c   :  { %v126_v53 = vsub.f32 1.0, %v176_v51 }
  0x5d   :  { %v127_v54 = vmul.f32 %v125_v52, %v101_v48 }
  0x5e   :  { %v128_v55 = vmul.f32 %v126_v53, %v102_v50 }
  0x60   :  { %v129_v56 = vadd.f32 %v128_v55, %v127_v54 }
  0x62   :  { %132 = vst [vmem:[#allocation7] sm:$0xff] %v129_v56 }
  0x63   :  { %232 = shalt.err (!%p229_p6)
}
  0x64   :  { %s233_s10 = scalar_lea.hbm %s307_s2, 128 }
  0x65   :  { %p234_p7 = scmp.ne.s32.totalorder %s307_s2, %s233_s10  ;;  %p237_p8 = scmp.lt.u32.totalorder %s233_s10, %s307_s2 }
  0x67   :  { %p239_p9 = pnand %p237_p8, %p234_p7 }
  0x69   :  { %242 = shalt.err (!%p239_p9)
}
  0x6a   :  { %142 = dma.vmem_to_hbm [thread:$0]  %s140_s6, 128, %s307_s2, [#allocation4]  }
  0x6b   :  { %247 = dma.done.wait [#allocation4], 128  }
  0x6c   :  { %248 = vsyncadd [#allocation4], 4294967168 }
  0x6d   :  { %146 = vsyncpa [#allocation3], 1 }
  0x6e   :  { %147 = vsyncpa [#allocation6], 1 }
  0x6f   :  { %148 = vsyncpa [#allocation4], 1 }

</bundles_post_ra>
